<compile_context>
chip_gen: v5e
topology: v5e:2x2
jax: 0.10.0
libtpu: 0.0.40
codegen_flags: <defaults>
</compile_context>

<pallas_src>
import functools

import jax
import jax.numpy as jnp
from jax.experimental import pallas as pl
from jax.experimental.pallas import tpu as pltpu

EPS = 1e-5          # nn.BatchNorm2d default eps
NEG_SLOPE = 0.1     # nn.LeakyReLU(0.1)


def _conv_stats_kernel(w_ref, p_ref, y_ref, stats_ref):
    # w_ref:     [Cout, Kp]      bf16, same block every grid step
    # p_ref:     [Kp, tile_hw]   bf16 im2col patches for image n, hw-tile j
    # y_ref:     [Cout, tile_hw] bf16 conv-result cache (consumed by phase 2)
    # stats_ref: [Cout, 2]       f32, accumulated across the hw grid axis
    y = jnp.dot(w_ref[...], p_ref[...], preferred_element_type=jnp.float32)
    y_ref[...] = y.astype(y_ref.dtype)
    s = jnp.sum(y, axis=1, keepdims=True)                     # [Cout, 1]
    ss = jnp.sum(y * y, axis=1, keepdims=True)                # [Cout, 1]
    part = jnp.concatenate([s, ss], axis=1)                   # [Cout, 2]

    @pl.when(pl.program_id(1) == 0)
    def _():
        stats_ref[...] = part

    @pl.when(pl.program_id(1) != 0)
    def _():
        stats_ref[...] += part


def _bn_lrelu_kernel(y_ref, scale_ref, shift_ref, o_ref):
    # Pure elementwise pass: folded BN (scale/shift) + LeakyReLU on cached y.
    y = y_ref[...].astype(jnp.float32)                        # [Cout, tile_hw]
    ybn = y * scale_ref[...] + shift_ref[...]
    o_ref[...] = jnp.where(ybn > 0, ybn, NEG_SLOPE * ybn)


def _vmem_capacity_bytes():
    try:
        info = pltpu.get_tpu_info()
        return int(getattr(info, "vmem_capacity_bytes", 64 << 20))
    except Exception:
        return 64 << 20


def _choose_tiling(hw, n_images, kp, cout, budget_bytes):
    """Pick tile_hw (multiple of 128) + padded HW from a VMEM footprint budget."""
    hw128 = ((hw + 127) // 128) * 128

    def footprint(t):
        w_bytes = 2 * cout * kp * 2                    # weights, double-buffered
        p1 = 2 * kp * t * 2 + 2 * cout * t * 2         # phase 1: patches-in + y-out (bf16)
        p2 = 2 * cout * t * 2 + 2 * cout * t * 4       # phase 2: y-in (bf16) + out (f32)
        return w_bytes + max(p1, p2) + (1 << 16)

    tile = 128
    t = 256
    while t <= hw128 and footprint(t) <= budget_bytes:
        tile = t
        t += 128
    tile = min(tile, hw128)
    # v7x has 2 TensorCores: make sure the "parallel" work splits into >= 2 blocks.
    if n_images == 1 and tile >= hw128 and hw128 >= 256:
        tile = max(128, (hw128 // 2 // 128) * 128)
    hw_p = ((hw + tile - 1) // tile) * tile
    return tile, hw_p


@functools.partial(jax.jit, static_argnames=("stride", "padding"))
def create_conv_forward(x, w, b, gamma, beta, stride=1, padding=1):
    """x: [N, Cin, H, W] (NCHW), w: [Cout, Cin, KH, KW] (OIHW). Returns NCHW f32."""
    # Training-mode BN subtracts the per-channel batch mean, so the per-channel
    # conv bias cancels exactly -> skip its add (and its DMA) entirely.
    del b
    N, Cin, H, W = x.shape
    Cout, _, KH, KW = w.shape
    Ho = (H + 2 * padding - KH) // stride + 1
    Wo = (W + 2 * padding - KW) // stride + 1
    HW = Ho * Wo
    M = N * HW                                   # true stats denominator
    K = Cin * KH * KW
    Kp = ((K + 15) // 16) * 16                   # bf16 sublane packing

    vmem_cap = _vmem_capacity_bytes()            # 64 MiB (v7x) / 128 MiB (v5e, v6e)
    budget = vmem_cap // 2
    vmem_limit = int(min(vmem_cap, budget + (16 << 20)))
    tile_hw, HWp = _choose_tiling(HW, N, Kp, Cout, budget)
    n_hw_tiles = HWp // tile_hw

    # ---- XLA glue: per-image im2col -> [N, K, HW] -> padded bf16 [N, Kp, HWp].
    # TODO(synk): long-term, move im2col in-kernel (DMA x tiles from HBM and feed
    # the MXU KH*KW shifted slices) to avoid materializing the 9x-sized patches
    # array; kept in XLA here for robustness.
    xp = jnp.pad(x, ((0, 0), (0, 0), (padding, padding), (padding, padding)))
    cols = []
    for kh in range(KH):
        for kw in range(KW):
            cols.append(xp[:, :, kh:kh + Ho * stride:stride,
                               kw:kw + Wo * stride:stride])    # [N, Cin, Ho, Wo]
    pat = jnp.stack(cols, axis=2)                  # [N, Cin, KH*KW, Ho, Wo]
    pat = pat.reshape(N, K, HW)                    # K order matches w.reshape(Cout, K)
    patches = jnp.pad(pat, ((0, 0), (0, Kp - K), (0, HWp - HW)))
    patches = patches.astype(jnp.bfloat16)         # halve dominant HBM bytes
    w2 = jnp.pad(w.reshape(Cout, K), ((0, 0), (0, Kp - K))).astype(jnp.bfloat16)

    w_spec = pl.BlockSpec((Cout, Kp), lambda n, j: (0, 0))
    p_spec = pl.BlockSpec((None, Kp, tile_hw), lambda n, j: (n, 0, j))
    y_spec = pl.BlockSpec((None, Cout, tile_hw), lambda n, j: (n, 0, j))
    stats_spec = pl.BlockSpec((None, Cout, 2), lambda n, j: (n, 0, 0))

    # ---- phase 1: conv (MXU, bf16 in / f32 acc), cache y (bf16) + per-image BN
    # partials accumulated in the resident stats block.  Images are independent
    # -> "parallel" (shards across v7x's 2 TCs); hw is the stats-accumulation
    # axis -> "arbitrary" and last in the grid.
    y_cache, stats = pl.pallas_call(
        _conv_stats_kernel,
        out_shape=(jax.ShapeDtypeStruct((N, Cout, HWp), jnp.bfloat16),
                   jax.ShapeDtypeStruct((N, Cout, 2), jnp.float32)),
        grid=(N, n_hw_tiles),
        in_specs=[w_spec, p_spec],
        out_specs=(y_spec, stats_spec),
        compiler_params=pltpu.CompilerParams(
            dimension_semantics=("parallel", "arbitrary"),
            vmem_limit_bytes=vmem_limit),
    )(w2, patches)

    # ---- tiny glue: combine per-image partials, fold BN into scale/shift.
    # (Padded hw columns contribute exactly 0 because the bias is dropped.)
    tot = jnp.sum(stats, axis=0)                               # [Cout, 2]
    mean = tot[:, 0] / M
    var = jnp.maximum(tot[:, 1] / M - mean * mean, 0.0)        # biased variance
    scale_v = gamma * jax.lax.rsqrt(var + EPS)
    shift_v = beta - mean * scale_v
    scale = scale_v.astype(jnp.float32).reshape(Cout, 1)
    shift = shift_v.astype(jnp.float32).reshape(Cout, 1)

    # ---- phase 2: elementwise BN + LeakyReLU over cached y, writing a lane-
    # dense NCHW-ordered [N, Cout, HWp] f32 output (no final transpose).
    out = pl.pallas_call(
        _bn_lrelu_kernel,
        out_shape=jax.ShapeDtypeStruct((N, Cout, HWp), jnp.float32),
        grid=(N, n_hw_tiles),
        in_specs=[y_spec,
                  pl.BlockSpec((Cout, 1), lambda n, j: (0, 0)),
                  pl.BlockSpec((Cout, 1), lambda n, j: (0, 0))],
        out_specs=pl.BlockSpec((None, Cout, tile_hw), lambda n, j: (n, 0, j)),
        compiler_params=pltpu.CompilerParams(
            dimension_semantics=("parallel", "parallel"),
            vmem_limit_bytes=vmem_limit),
    )(y_cache, scale, shift)

    # free reshape (no transpose); drop hw padding if any
    return out[:, :, :HW].reshape(N, Cout, Ho, Wo)


if __name__ == "__main__":
    # createConv(params) with params = (in_ch=4, out_ch=8, k=3, stride=1, pad=1)
    N, Cin, H, W = 2, 4, 16, 16
    Cout, KH, KW = 8, 3, 3

    key = jax.random.PRNGKey(0)
    k1, k2, k3, k4, k5 = jax.random.split(key, 5)
    x = jax.random.normal(k1, (N, Cin, H, W), jnp.float32)
    w = 0.1 * jax.random.normal(k2, (Cout, Cin, KH, KW), jnp.float32)
    b = 0.1 * jax.random.normal(k3, (Cout,), jnp.float32)
    gamma = 1.0 + 0.1 * jax.random.normal(k4, (Cout,), jnp.float32)
    beta = 0.1 * jax.random.normal(k5, (Cout,), jnp.float32)

    out = create_conv_forward(x, w, b, gamma, beta, stride=1, padding=1)
    out = jax.block_until_ready(out)

    # plain-JAX reference (training-mode BN with biased batch variance)
    conv = jax.lax.conv_general_dilated(
        x, w, window_strides=(1, 1), padding=((1, 1), (1, 1)),
        dimension_numbers=("NCHW", "OIHW", "NCHW")) + b[None, :, None, None]
    mean = conv.mean(axis=(0, 2, 3), keepdims=True)
    var = conv.var(axis=(0, 2, 3), keepdims=True)
    ybn = (conv - mean) * jax.lax.rsqrt(var + EPS) * gamma[None, :, None, None] \
        + beta[None, :, None, None]
    ref = jnp.where(ybn > 0, ybn, NEG_SLOPE * ybn)

    assert out.shape == (N, Cout, H, W)
    # bf16 MXU operands / bf16 y-cache (f32 accumulation) -> ~1e-2 tolerance
    assert jnp.allclose(out, ref, atol=3e-2, rtol=3e-2), \
        float(jnp.max(jnp.abs(out - ref)))

    print("KERNEL_OK")
</pallas_src>

<mosaic_0001>
module attributes {stable_mosaic.version = 11 : i64} {
  func.func @_conv_stats_kernel(%arg0: i32, %arg1: i32, %arg2: memref<8x48xbf16, #tpu.memory_space<vmem>>, %arg3: memref<1x48x256xbf16, #tpu.memory_space<vmem>>, %arg4: memref<1x8x256xbf16, #tpu.memory_space<vmem>>, %arg5: memref<1x8x2xf32, #tpu.memory_space<vmem>>) attributes {dimension_semantics = [#tpu.dimension_semantics<parallel>, #tpu.dimension_semantics<arbitrary>], iteration_bounds = array<i64: 2, 1>, scalar_prefetch = 0 : i64, scratch_operands = 0 : i64, tpu.core_type = #tpu.core_type<tc>, window_params = [{pipeline_mode = #tpu.pipeline_mode<synchronous>, transform_indices = @transform_0, window_bounds = array<i64: 8, 48>}, {transform_indices = @transform_1, window_bounds = array<i64: 1, 48, 256>}, {transform_indices = @transform_2, window_bounds = array<i64: 1, 8, 256>}, {transform_indices = @transform_3, window_bounds = array<i64: 1, 8, 2>}]} {
    %c0 = arith.constant 0 : index
    %c0_0 = arith.constant 0 : index
    %0 = vector.load %arg2[%c0, %c0_0] : memref<8x48xbf16, #tpu.memory_space<vmem>>, vector<8x48xbf16>
    %c0_1 = arith.constant 0 : index
    %c0_2 = arith.constant 0 : index
    %c0_3 = arith.constant 0 : index
    %1 = vector.load %arg3[%c0_1, %c0_2, %c0_3] : memref<1x48x256xbf16, #tpu.memory_space<vmem>>, vector<1x48x256xbf16>
    %2 = vector.shape_cast %1 : vector<1x48x256xbf16> to vector<48x256xbf16>
    %cst = arith.constant dense<0.000000e+00> : vector<8x256xf32>
    %3 = tpu.matmul %0, %2, %cst {dimension_numbers = #tpu.dot_dimension_numbers<[1], [0], [0], [1], [0, 0, 1, 1], [], []>} : vector<8x48xbf16>, vector<48x256xbf16>, vector<8x256xf32> -> vector<8x256xf32>
    %4 = arith.truncf %3 : vector<8x256xf32> to vector<8x256xbf16>
    %c0_4 = arith.constant 0 : index
    %c0_5 = arith.constant 0 : index
    %c0_6 = arith.constant 0 : index
    %5 = vector.load %arg4[%c0_4, %c0_5, %c0_6] : memref<1x8x256xbf16, #tpu.memory_space<vmem>>, vector<1x8x256xbf16>
    %6 = vector.shape_cast %5 : vector<1x8x256xbf16> to vector<8x256xbf16>
    %7 = vector.shape_cast %4 : vector<8x256xbf16> to vector<1x8x256xbf16>
    tpu.vector_store %arg4[%c0_4, %c0_5, %c0_6], %7 {strides = array<i32>} : memref<1x8x256xbf16, #tpu.memory_space<vmem>>, vector<1x8x256xbf16>,
    %cst_7 = arith.constant dense<0.000000e+00> : vector<8xf32>
    %8 = vector.multi_reduction <add>, %3, %cst_7 [1] : vector<8x256xf32> to vector<8xf32>
    %9 = vector.shape_cast %8 : vector<8xf32> to vector<8x1xf32>
    %10 = arith.mulf %3, %3 : vector<8x256xf32>
    %cst_8 = arith.constant dense<0.000000e+00> : vector<8xf32>
    %11 = vector.multi_reduction <add>, %10, %cst_8 [1] : vector<8x256xf32> to vector<8xf32>
    %12 = vector.shape_cast %11 : vector<8xf32> to vector<8x1xf32>
    %13 = tpu.concatenate %9, %12 in 1 : vector<8x1xf32>, vector<8x1xf32> -> vector<8x2xf32>
    %c0_i32 = arith.constant 0 : i32
    %14 = arith.cmpi eq, %arg1, %c0_i32 : i32
    %15 = arith.extui %14 : i1 to i32
    %c0_i32_9 = arith.constant 0 : i32
    %16 = arith.cmpi ne, %15, %c0_i32_9 : i32
    scf.if %16 {
      %c0_12 = arith.constant 0 : index
      %c0_13 = arith.constant 0 : index
      %c0_14 = arith.constant 0 : index
      %20 = vector.load %arg5[%c0_12, %c0_13, %c0_14] : memref<1x8x2xf32, #tpu.memory_space<vmem>>, vector<1x8x2xf32>
      %21 = vector.shape_cast %20 : vector<1x8x2xf32> to vector<8x2xf32>
      %22 = vector.shape_cast %13 : vector<8x2xf32> to vector<1x8x2xf32>
      tpu.vector_store %arg5[%c0_12, %c0_13, %c0_14], %22 {strides = array<i32>} : memref<1x8x2xf32, #tpu.memory_space<vmem>>, vector<1x8x2xf32>,
    } else {
    }
    %c0_i32_10 = arith.constant 0 : i32
    %17 = arith.cmpi ne, %arg1, %c0_i32_10 : i32
    %18 = arith.extui %17 : i1 to i32
    %c0_i32_11 = arith.constant 0 : i32
    %19 = arith.cmpi ne, %18, %c0_i32_11 : i32
    scf.if %19 {
      %c0_12 = arith.constant 0 : index
      %c0_13 = arith.constant 0 : index
      %c0_14 = arith.constant 0 : index
      %20 = vector.load %arg5[%c0_12, %c0_13, %c0_14] : memref<1x8x2xf32, #tpu.memory_space<vmem>>, vector<1x8x2xf32>
      %21 = vector.shape_cast %20 : vector<1x8x2xf32> to vector<8x2xf32>
      %22 = arith.addf %21, %13 : vector<8x2xf32>
      %c0_15 = arith.constant 0 : index
      %c0_16 = arith.constant 0 : index
      %c0_17 = arith.constant 0 : index
      %23 = vector.load %arg5[%c0_15, %c0_16, %c0_17] : memref<1x8x2xf32, #tpu.memory_space<vmem>>, vector<1x8x2xf32>
      %24 = vector.shape_cast %23 : vector<1x8x2xf32> to vector<8x2xf32>
      %25 = vector.shape_cast %22 : vector<8x2xf32> to vector<1x8x2xf32>
      tpu.vector_store %arg5[%c0_15, %c0_16, %c0_17], %25 {strides = array<i32>} : memref<1x8x2xf32, #tpu.memory_space<vmem>>, vector<1x8x2xf32>,
    } else {
    }
    return
  }
  func.func @transform_0(%arg0: i32, %arg1: i32) -> (i32, i32) {
    %c0_i32 = arith.constant 0 : i32
    %c0_i32_0 = arith.constant 0 : i32
    %c0_i32_1 = arith.constant 0 : i32
    return %c0_i32, %c0_i32_0 : i32, i32
  }
  func.func @transform_1(%arg0: i32, %arg1: i32) -> (i32, i32, i32) {
    %c0_i32 = arith.constant 0 : i32
    %c0_i32_0 = arith.constant 0 : i32
    return %arg0, %c0_i32, %arg1 : i32, i32, i32
  }
  func.func @transform_2(%arg0: i32, %arg1: i32) -> (i32, i32, i32) {
    %c0_i32 = arith.constant 0 : i32
    %c0_i32_0 = arith.constant 0 : i32
    return %arg0, %c0_i32, %arg1 : i32, i32, i32
  }
  func.func @transform_3(%arg0: i32, %arg1: i32) -> (i32, i32, i32) {
    %c0_i32 = arith.constant 0 : i32
    %c0_i32_0 = arith.constant 0 : i32
    %c0_i32_1 = arith.constant 0 : i32
    return %arg0, %c0_i32, %c0_i32_0 : i32, i32, i32
  }
}

module attributes {stable_mosaic.version = 11 : i64} {
  func.func @_bn_lrelu_kernel(%arg0: i32, %arg1: i32, %arg2: memref<1x8x256xbf16, #tpu.memory_space<vmem>>, %arg3: memref<8x1xf32, #tpu.memory_space<vmem>>, %arg4: memref<8x1xf32, #tpu.memory_space<vmem>>, %arg5: memref<1x8x256xf32, #tpu.memory_space<vmem>>) attributes {dimension_semantics = [#tpu.dimension_semantics<parallel>, #tpu.dimension_semantics<parallel>], iteration_bounds = array<i64: 2, 1>, scalar_prefetch = 0 : i64, scratch_operands = 0 : i64, tpu.core_type = #tpu.core_type<tc>, window_params = [{transform_indices = @transform_0, window_bounds = array<i64: 1, 8, 256>}, {pipeline_mode = #tpu.pipeline_mode<synchronous>, transform_indices = @transform_1, window_bounds = array<i64: 8, 1>}, {pipeline_mode = #tpu.pipeline_mode<synchronous>, transform_indices = @transform_2, window_bounds = array<i64: 8, 1>}, {transform_indices = @transform_3, window_bounds = array<i64: 1, 8, 256>}]} {
    %c0 = arith.constant 0 : index
    %c0_0 = arith.constant 0 : index
    %c0_1 = arith.constant 0 : index
    %0 = vector.load %arg2[%c0, %c0_0, %c0_1] : memref<1x8x256xbf16, #tpu.memory_space<vmem>>, vector<1x8x256xbf16>
    %1 = vector.shape_cast %0 : vector<1x8x256xbf16> to vector<8x256xbf16>
    %2 = arith.extf %1 : vector<8x256xbf16> to vector<8x256xf32>
    %c0_2 = arith.constant 0 : index
    %c0_3 = arith.constant 0 : index
    %3 = vector.load %arg3[%c0_2, %c0_3] : memref<8x1xf32, #tpu.memory_space<vmem>>, vector<8x1xf32>
    %4 = vector.broadcast %3 : vector<8x1xf32> to vector<8x256xf32>
    %5 = arith.mulf %2, %4 : vector<8x256xf32>
    %c0_4 = arith.constant 0 : index
    %c0_5 = arith.constant 0 : index
    %6 = vector.load %arg4[%c0_4, %c0_5] : memref<8x1xf32, #tpu.memory_space<vmem>>, vector<8x1xf32>
    %7 = vector.broadcast %6 : vector<8x1xf32> to vector<8x256xf32>
    %8 = arith.addf %5, %7 : vector<8x256xf32>
    %cst = arith.constant 0.000000e+00 : f32
    %9 = vector.broadcast %cst : f32 to vector<8x256xf32>
    %10 = arith.cmpf ogt, %8, %9 : vector<8x256xf32>
    %cst_6 = arith.constant 1.000000e-01 : f32
    %11 = vector.broadcast %cst_6 : f32 to vector<8x256xf32>
    %12 = arith.mulf %11, %8 : vector<8x256xf32>
    %13 = arith.select %10, %8, %12 : vector<8x256xi1>, vector<8x256xf32>
    %c0_7 = arith.constant 0 : index
    %c0_8 = arith.constant 0 : index
    %c0_9 = arith.constant 0 : index
    %14 = vector.load %arg5[%c0_7, %c0_8, %c0_9] : memref<1x8x256xf32, #tpu.memory_space<vmem>>, vector<1x8x256xf32>
    %15 = vector.shape_cast %14 : vector<1x8x256xf32> to vector<8x256xf32>
    %16 = vector.shape_cast %13 : vector<8x256xf32> to vector<1x8x256xf32>
    tpu.vector_store %arg5[%c0_7, %c0_8, %c0_9], %16 {strides = array<i32>} : memref<1x8x256xf32, #tpu.memory_space<vmem>>, vector<1x8x256xf32>,
    return
  }
  func.func @transform_0(%arg0: i32, %arg1: i32) -> (i32, i32, i32) {
    %c0_i32 = arith.constant 0 : i32
    %c0_i32_0 = arith.constant 0 : i32
    return %arg0, %c0_i32, %arg1 : i32, i32, i32
  }
  func.func @transform_1(%arg0: i32, %arg1: i32) -> (i32, i32) {
    %c0_i32 = arith.constant 0 : i32
    %c0_i32_0 = arith.constant 0 : i32
    %c0_i32_1 = arith.constant 0 : i32
    return %c0_i32, %c0_i32_0 : i32, i32
  }
  func.func @transform_2(%arg0: i32, %arg1: i32) -> (i32, i32) {
    %c0_i32 = arith.constant 0 : i32
    %c0_i32_0 = arith.constant 0 : i32
    %c0_i32_1 = arith.constant 0 : i32
    return %c0_i32, %c0_i32_0 : i32, i32
  }
  func.func @transform_3(%arg0: i32, %arg1: i32) -> (i32, i32, i32) {
    %c0_i32 = arith.constant 0 : i32
    %c0_i32_0 = arith.constant 0 : i32
    return %arg0, %c0_i32, %arg1 : i32, i32, i32
  }
}

</mosaic_0001>

<bundles_post_ra>
// kernel: create_conv_forward.3
= control target key start
LH: loop header
LB: loop body
LE: loop exit
PB: predicated region body
PF: predicated region fallthrough
CT: control target
= control target key end

     0   :  { %s408_s12 = smov 0   ;;  %s410_s13 = smov 0   ;;  %s447_s0 = inlined_call_operand.vmem [shape: bf16[2,8,256], index: 0, kind: input, shape index: {}]   ;;  %s448_s1 = inlined_call_operand.vmem [shape: f32[8,1], index: 1, kind: input, shape index: {}]   ;;  %s449_s2 = inlined_call_operand.vmem [shape: f32[8,1], index: 2, kind: input, shape index: {}]   ;;  %s450_s3 = inlined_call_operand.vmem [shape: f32[2,8,256], index: 3, kind: output, shape index: {}]  }
   0x1   :  { %s412_s14 = smov 0  }
   0x2 LB: > { %s25_s15 = sadd.s32 1, %s381_s13  ;;  %p328_p0 = scmp.ge.s32.totalorder %s385_s14, 1  ;;  %s385_s14 = sphi %s412_s14, %s13_s14   ;;  %s381_s13 = sphi %s410_s13, %s452_s13   ;;  %s377_s12 = sphi %s408_s12, %s451_s12  }
   0x3   : > { %p27_p1 = scmp.ge.s32.totalorder %s25_s15, 2  ;;  %p158_p2 = scmp.lt.s32.totalorder %s385_s14, 3 }
   0x5   : > { %s454_s15 = smov (%p27_p1, %s25_s15), 0  ;;  %p159_p3 = pnand %p328_p0, %p158_p2 }
   0x6   : > { %p191_p4 = scmp.lt.s32.totalorder (!%p159_p3), %s377_s12, 1 }
   0x7   : > { %162 = sbr.rel (%p159_p3) target bundleno = 144 (0x90), region = 32 }
   0xc   : > { %v213_v0 = vld [vmem:[%s448_s1] sm:$0xff]  ;;  %v387_v1 = vmov 0   ;;  %s456_s12 = smov (!%p191_p4, %s377_s12), 1 }
   0xd   : > { %362 = vset.pattern.permute.xlu0 %v387_v1  ;;  %v221_v2 = vld [vmem:[%s449_s2] sm:$0xff]  ;;  %s335_s20 = sshll.u32 %s456_s12, 3  ;;  %s336_s24 = sshll.u32 %s456_s12, 4 }
   0xe   : > { %216 = vperm.xlu0 %362, %v213_v0   ;;  %s198_s23 = scalar_lea.vmem %s447_s0, %s335_s20  ;;  %s208_s27 = scalar_lea.vmem %s450_s3, %s336_s24 }
   0xf   : > { %v210_v4 = vld [vmem:[%s198_s23] sm:$0xff] }
  0x10   : > { %v211_v5 = vunpack.c.l.bf16 %v210_v4  ;;  %v212_v6 = vunpack.c.h.bf16 %v210_v4 }
  0x16   : > { %224 = vperm.xlu0 %362, %v221_v2  }
  0x80   : > { %v217_v3 = vpop.permute.xlu0 %216 }
  0x81   : > { %v219_v7 = vmul.f32 %v217_v3, %v211_v5  ;;  %v220_v8 = vmul.f32 %v217_v3, %v212_v6 }
  0x88   : > { %v225_v9 = vpop.permute.xlu0 %224 }
  0x89   : > { %v227_v10 = vadd.f32 %v225_v9, %v219_v7  ;;  %v228_v11 = vadd.f32 %v225_v9, %v220_v8 }
  0x8b   : > { %vm229_vm0 = vcmp.gt.f32.partialorder %v227_v10, 0.0  ;;  %vm230_vm1 = vcmp.gt.f32.partialorder %v228_v11, 0.0  ;;  %v231_v12 = vmul.f32 0.1, %v227_v10  ;;  %v232_v13 = vmul.f32 0.1, %v228_v11 }
  0x8d   : > { %v233_v14 = vsel %vm229_vm0, %v227_v10, %v231_v12  ;;  %v234_v15 = vsel %vm230_vm1, %v228_v11, %v232_v13 }
  0x8e   : > { %235 = vst [vmem:[%s208_s27] sm:$0xff] %v233_v14 }
  0x8f   : > { %236 = vst [vmem:[%s208_s27 + $0x8] sm:$0xff] %v234_v15 }
  0x90 PF: > { %s13_s14 = sadd.s32 1, %s385_s14   ;;  %s451_s12 = smov %s381_s13 }
  0x91   : > { %p10_p5 = scmp.ge.s32.totalorder %s13_s14, 4   ;;  %s452_s13 = smov %s454_s15 }
  0x93   :  { %12 = sbr.rel (!%p10_p5) target bundleno = 2 (0x2), region = 62 }

// kernel: create_conv_forward.2
= control target key start
LH: loop header
LB: loop body
LE: loop exit
PB: predicated region body
PF: predicated region fallthrough
CT: control target
= control target key end

     0   :  { %s546_s12 = smov 0   ;;  %s548_s13 = smov 0   ;;  %s589_s0 = inlined_call_operand.vmem [shape: bf16[8,48], index: 0, kind: input, shape index: {}]   ;;  %s590_s1 = inlined_call_operand.vmem [shape: bf16[2,48,256], index: 1, kind: input, shape index: {}]   ;;  %s591_s2 = inlined_call_operand.vmem [shape: bf16[2,8,256], index: 2, kind: output, shape index: {0}]   ;;  %s592_s3 = inlined_call_operand.vmem [shape: f32[2,8,2], index: 3, kind: output, shape index: {1}]  }
   0x1   :  { %s550_s14 = smov 0  }
   0x2 LB: > { %s26_s15 = sadd.s32 1, %s520_s13  ;;  %p437_p0 = scmp.ge.s32.totalorder %s524_s14, 1  ;;  %s524_s14 = sphi %s550_s14, %s14_s14   ;;  %s520_s13 = sphi %s548_s13, %s594_s13   ;;  %s516_s12 = sphi %s546_s12, %s593_s12  }
   0x3   : > { %p28_p1 = scmp.ge.s32.totalorder %s26_s15, 2  ;;  %p161_p2 = scmp.lt.s32.totalorder %s524_s14, 3 }
   0x5   : > { %s596_s15 = smov (%p28_p1, %s26_s15), 0  ;;  %p162_p3 = pnand %p437_p0, %p161_p2 }
   0x6   : > { %p198_p4 = scmp.lt.s32.totalorder (!%p162_p3), %s516_s12, 1 }
   0x7   : > { %165 = sbr.rel (%p162_p3) target bundleno = 285 (0x11d), region = 28 }
   0xc   : > { %s598_s12 = smov (!%p198_p4, %s516_s12), 1  ;;  %v222_v18 = vld [vmem:[%s589_s0] sm:$0xf]  ;;  %vm259_vm0 = vcmask 392192   ;;  %vm299_vm1 = vcmask 7168   ;;  %vm305_vm2 = vcmask 15360  }
   0xd   : > { %s477_s16 = smul.u32 48, %s598_s12  ;;  %s470_s22 = sshll.u32 %s598_s12, 3 }
   0xe   : > { %s215_s25 = scalar_lea.vmem %s591_s2, %s470_s22  ;;  %s220_s28 = scalar_lea.vmem %s592_s3, %s470_s22 }
   0xf   : > { %s205_s19 = scalar_lea.vmem %s590_s1, %s477_s16 }
  0x10   : > { %v460_v0 = vld [vmem:[%s205_s19 + $0x20] sm:$0xf]  ;;  %v476_v1 = vld [vmem:[%s205_s19 + $0x24] sm:$0xf0]  ;;  %v475_v2 = vld [vmem:[%s205_s19 + $0x24] sm:$0xf] }
  0x11   : > { %v461_v3 = vor.u32 %v476_v1, %v460_v0  ;;  %v462_v4 = vld [vmem:[%s205_s19 + $0x28] sm:$0xf0]  ;;  %v452_v5 = vld [vmem:[%s205_s19 + $0x10] sm:$0xf]  ;;  %v474_v6 = vld [vmem:[%s205_s19 + $0x14] sm:$0xf0] }
  0x12   : > { %v465_v7 = vor.u32 %v475_v2, %v462_v4  ;;  %v473_v8 = vld [vmem:[%s205_s19 + $0x14] sm:$0xf]  ;;  %v454_v9 = vld [vmem:[%s205_s19 + $0x18] sm:$0xf0]  ;;  %v453_v10 = vor.u32 %v474_v6, %v452_v5  ;;  %v444_v12 = vld [vmem:[%s205_s19] sm:$0xf] }
  0x13   : > { %268 = vmatpush.bf16.msra.mxu0 %v461_v3  ;;  %v457_v11 = vor.u32 %v473_v8, %v454_v9  ;;  %v472_v13 = vld [vmem:[%s205_s19 + $0x4] sm:$0xf0]  ;;  %v471_v14 = vld [vmem:[%s205_s19 + $0x4] sm:$0xf]  ;;  %v446_v15 = vld [vmem:[%s205_s19 + $0x8] sm:$0xf0] }
  0x14   : > { %281 = vmatpush.bf16.msra.mxu1 %v465_v7  ;;  %v445_v16 = vor.u32 %v472_v13, %v444_v12  ;;  %v449_v17 = vor.u32 %v471_v14, %v446_v15 }
  0x17   : > { %269 = vmatpush.bf16.msra.mxu0 %v453_v10 }
  0x18   : > { %282 = vmatpush.bf16.msra.mxu1 %v457_v11 }
  0x1b   : > { %270 = vmatpush.bf16.msra.mxu0 %v445_v16 }
  0x1c   : > { %283 = vmatpush.bf16.msra.mxu1 %v449_v17 }
  0x1e   : > { %466 = vmatmul.msk.bf16.vlgmr.msra.gmra.mxu0 %vm259_vm0, %v222_v18 }
  0x1f   : > { %467 = vmatmul.msk.bf16.vlgmr.msra.gmra.mxu1 %vm259_vm0, %v222_v18 }
  0x9b   : > { %v272_v19 = vpop.f32.mrf.mxu0 }
  0x9c   : > { %v285_v20 = vpop.f32.mrf.mxu1  ;;  %v294_v23 = vmul.f32 %v272_v19, %v272_v19 }
  0x9d   : > { %v289_v21 = vpack.c.bf16 %v285_v20, %v272_v19  ;;  %v291_v22 = vadd.f32 %v285_v20, %v272_v19  ;;  %v295_v24 = vmul.f32 %v285_v20, %v285_v20 }
  0x9f   : > { %290 = vst [vmem:[%s215_s25] sm:$0xff] %v289_v21  ;;  %292 = vadd.xlane.f32.xlu0 %v291_v22  ;;  %v296_v27 = vadd.f32 %v295_v24, %v294_v23 }
  0xa3   : > { %v274_v25 = vpop.f32.mrf.mxu0 }
  0xa4   : > { %v287_v26 = vpop.f32.mrf.mxu1 }
  0xa7   : > { %297 = vadd.xlane.f32.xlu0 %v296_v27 }
 0x112   : > { %v293_v28 = vpop.xlane.xlu0 %292 }
 0x11a   : > { %v298_v29 = vpop.xlane.xlu0 %297 }
 0x11b   : > { %v300_v30 = vsel %vm299_vm1, %v293_v28, %v298_v29 }
 0x11c   : > { %306 = vst.msk [vmem:[%s220_s28] sm:$0xff] %vm305_vm2, %v300_v30 }
 0x11d PF: > { %s14_s14 = sadd.s32 1, %s524_s14   ;;  %s593_s12 = smov %s520_s13 }
 0x11e   : > { %p11_p5 = scmp.ge.s32.totalorder %s14_s14, 4   ;;  %s594_s13 = smov %s596_s15 }
 0x120   :  { %13 = sbr.rel (!%p11_p5) target bundleno = 2 (0x2), region = 78 }

</bundles_post_ra>
